<compile_context>
chip_gen: v6e
topology: v6e:2x2x1
jax: 0.10.0
libtpu: 0.0.40
codegen_flags: <defaults>
</compile_context>

<pallas_src>
import jax
import jax.numpy as jnp
from jax.experimental import pallas as pl
from jax.experimental.pallas import tpu as pltpu


# ----------------------------------------------------------------------------
# Kernel
# ----------------------------------------------------------------------------
def actor_kernel(s_ref, w1_ref, w2t_ref, u_ref):
    # s_ref:   (tile_B, n_states)           raw observations
    # w1_ref:  (n_states + 1, H)            rows 0..K-1 = W1, last row = b1
    #                                       (column `hidden` of bias row == 1.0)
    # w2t_ref: (n_actions, H)               row a = W2[:, a], b2[a] at col `hidden`
    # u_ref:   (tile_B, n_actions)
    n_states = s_ref.shape[1]
    n_actions = w2t_ref.shape[0]

    # ---- layer 1: K broadcast-FMAs on the VPU (K is tiny; MXU would be ~2% used)
    x = w1_ref[n_states:n_states + 1, :]            # bias row, (1, H)
    for k in range(n_states):                       # static unroll, K = 3
        x = x + s_ref[:, k:k + 1] * w1_ref[k:k + 1, :]
    x = jnp.maximum(x, 0.0)                         # ReLU; constant lane stays 1.0

    # ---- layer 2: per-action VPU multiply + XLU lane reduction (N is tiny)
    cols = [
        jnp.sum(x * w2t_ref[a:a + 1, :], axis=-1, keepdims=True)
        for a in range(n_actions)
    ]
    z = cols[0] if n_actions == 1 else jnp.concatenate(cols, axis=-1)

    u_ref[...] = 2.0 * jnp.tanh(z)                  # EUP tanh


# ----------------------------------------------------------------------------
# Wrapper
# ----------------------------------------------------------------------------
def actor_net_forward(s, w1_aug, w2t_aug):
    """s: (B, n_states) f32; packed params from pack_actor_params.
    Returns (B, n_actions) f32."""
    B, n_states = s.shape
    n_actions, H = w2t_aug.shape
    assert w1_aug.shape == (n_states + 1, H)

    # Parallel batch grid: v7x's 2 TensorCores each take half; on v5e/v6e the
    # grid is a cheap sequential loop (or a single step for small B).
    tile_b = 128 if (B % 128 == 0 and B > 128) else B
    grid = (B // tile_b,)

    flops = 2 * B * (n_states * H + H * n_actions)
    bytes_accessed = 4 * (s.size + w1_aug.size + w2t_aug.size + B * n_actions)

    return pl.pallas_call(
        actor_kernel,
        out_shape=jax.ShapeDtypeStruct((B, n_actions), jnp.float32),
        grid=grid,
        in_specs=[
            pl.BlockSpec((tile_b, n_states), lambda i: (i, 0)),
            pl.BlockSpec((n_states + 1, H), lambda i: (0, 0)),
            pl.BlockSpec((n_actions, H), lambda i: (0, 0)),
        ],
        out_specs=pl.BlockSpec((tile_b, n_actions), lambda i: (i, 0)),
        compiler_params=pltpu.CompilerParams(
            dimension_semantics=("parallel",)),
        cost_estimate=pl.CostEstimate(
            flops=flops,
            transcendentals=B * n_actions,
            bytes_accessed=bytes_accessed),
    )(s, w1_aug, w2t_aug)


# ----------------------------------------------------------------------------
# Parameter packing (done once, outside the per-step call)
# ----------------------------------------------------------------------------
def pack_actor_params(w1, b1, w2, b2):
    """Fold biases + pad hidden to a lane-aligned width (zeros are inert).

    w1: (n_states, hidden)   b1: (hidden,) or (1, hidden)
    w2: (hidden, n_actions)  b2: (n_actions,) or (1, n_actions)
    """
    n_states, hidden = w1.shape
    n_actions = w2.shape[1]
    b1 = jnp.reshape(jnp.asarray(b1, jnp.float32), (hidden,))
    b2 = jnp.reshape(jnp.asarray(b2, jnp.float32), (n_actions,))

    # Round hidden+1 up to 128 lanes; the extra lane at index `hidden` is the
    # constant-one lane that carries b2 through the second layer.
    H = ((hidden + 1 + 127) // 128) * 128

    w1_aug = jnp.zeros((n_states + 1, H), jnp.float32)
    w1_aug = w1_aug.at[:n_states, :hidden].set(w1)
    w1_aug = w1_aug.at[n_states, :hidden].set(b1)
    w1_aug = w1_aug.at[n_states, hidden].set(1.0)      # constant-one lane

    w2t_aug = jnp.zeros((n_actions, H), jnp.float32)
    w2t_aug = w2t_aug.at[:, :hidden].set(w2.T)
    w2t_aug = w2t_aug.at[:, hidden].set(b2)            # b2 folded in
    return w1_aug, w2t_aug


def init_actor_params(key, n_states, n_actions, hidden=100):
    """PyTorch nn.Linear default init: U(-1/sqrt(fan_in), 1/sqrt(fan_in))."""
    k1, k2, k3, k4 = jax.random.split(key, 4)
    lim1 = 1.0 / jnp.sqrt(jnp.float32(n_states))
    lim2 = 1.0 / jnp.sqrt(jnp.float32(hidden))
    w1 = jax.random.uniform(k1, (n_states, hidden), jnp.float32, -lim1, lim1)
    b1 = jax.random.uniform(k2, (hidden,), jnp.float32, -lim1, lim1)
    w2 = jax.random.uniform(k3, (hidden, n_actions), jnp.float32, -lim2, lim2)
    b2 = jax.random.uniform(k4, (n_actions,), jnp.float32, -lim2, lim2)
    return w1, b1, w2, b2


def actor_net_ref(s, w1, b1, w2, b2):
    """Pure-JAX reference (unpadded, unfused) for correctness check."""
    x = jnp.maximum(s @ w1 + b1[None, :], 0.0)
    return 2.0 * jnp.tanh(x @ w2 + b2[None, :])


if __name__ == "__main__":
    # Pendulum-v0 actor: n_states = 3, n_actions = 1.
    # Use a realistic DDPG replay-buffer batch so the call is amortized.
    n_states, n_actions, batch = 3, 1, 256
    key = jax.random.PRNGKey(0)
    k_s, k_p = jax.random.split(key)

    s = jax.random.normal(k_s, (batch, n_states), jnp.float32)
    w1, b1, w2, b2 = init_actor_params(k_p, n_states, n_actions)
    w1_aug, w2t_aug = pack_actor_params(w1, b1, w2, b2)

    u = actor_net_forward(s, w1_aug, w2t_aug)
    u = jax.block_until_ready(u)

    u_ref = actor_net_ref(s, w1, b1, w2, b2)
    assert u.shape == (batch, n_actions)
    assert jnp.allclose(u, u_ref, atol=1e-5, rtol=1e-5), "mismatch vs reference"

    print("KERNEL_OK")
</pallas_src>

<mosaic_0001>
module attributes {stable_mosaic.version = 11 : i64} {
  func.func @actor_kernel(%arg0: i32, %arg1: memref<128x3xf32, #tpu.memory_space<vmem>>, %arg2: memref<4x128xf32, #tpu.memory_space<vmem>>, %arg3: memref<1x128xf32, #tpu.memory_space<vmem>>, %arg4: memref<128x1xf32, #tpu.memory_space<vmem>>) attributes {dimension_semantics = [#tpu.dimension_semantics<parallel>], iteration_bounds = array<i64: 2>, scalar_prefetch = 0 : i64, scratch_operands = 0 : i64, tpu.core_type = #tpu.core_type<tc>, window_params = [{transform_indices = @transform_0, window_bounds = array<i64: 128, 3>}, {pipeline_mode = #tpu.pipeline_mode<synchronous>, transform_indices = @transform_1, window_bounds = array<i64: 4, 128>}, {pipeline_mode = #tpu.pipeline_mode<synchronous>, transform_indices = @transform_2, window_bounds = array<i64: 1, 128>}, {transform_indices = @transform_3, window_bounds = array<i64: 128, 1>}]} {
    %c3 = arith.constant 3 : index
    %c0 = arith.constant 0 : index
    %0 = vector.load %arg2[%c3, %c0] : memref<4x128xf32, #tpu.memory_space<vmem>>, vector<1x128xf32>
    %c0_0 = arith.constant 0 : index
    %c0_1 = arith.constant 0 : index
    %1 = vector.load %arg1[%c0_0, %c0_1] : memref<128x3xf32, #tpu.memory_space<vmem>>, vector<128x1xf32>
    %c0_2 = arith.constant 0 : index
    %c0_3 = arith.constant 0 : index
    %2 = vector.load %arg2[%c0_2, %c0_3] : memref<4x128xf32, #tpu.memory_space<vmem>>, vector<1x128xf32>
    %3 = vector.broadcast %1 : vector<128x1xf32> to vector<128x128xf32>
    %4 = vector.broadcast %2 : vector<1x128xf32> to vector<128x128xf32>
    %5 = arith.mulf %3, %4 : vector<128x128xf32>
    %6 = vector.broadcast %0 : vector<1x128xf32> to vector<128x128xf32>
    %7 = arith.addf %6, %5 : vector<128x128xf32>
    %c0_4 = arith.constant 0 : index
    %c1 = arith.constant 1 : index
    %8 = vector.load %arg1[%c0_4, %c1] : memref<128x3xf32, #tpu.memory_space<vmem>>, vector<128x1xf32>
    %c1_5 = arith.constant 1 : index
    %c0_6 = arith.constant 0 : index
    %9 = vector.load %arg2[%c1_5, %c0_6] : memref<4x128xf32, #tpu.memory_space<vmem>>, vector<1x128xf32>
    %10 = vector.broadcast %8 : vector<128x1xf32> to vector<128x128xf32>
    %11 = vector.broadcast %9 : vector<1x128xf32> to vector<128x128xf32>
    %12 = arith.mulf %10, %11 : vector<128x128xf32>
    %13 = arith.addf %7, %12 : vector<128x128xf32>
    %c0_7 = arith.constant 0 : index
    %c2 = arith.constant 2 : index
    %14 = vector.load %arg1[%c0_7, %c2] : memref<128x3xf32, #tpu.memory_space<vmem>>, vector<128x1xf32>
    %c2_8 = arith.constant 2 : index
    %c0_9 = arith.constant 0 : index
    %15 = vector.load %arg2[%c2_8, %c0_9] : memref<4x128xf32, #tpu.memory_space<vmem>>, vector<1x128xf32>
    %16 = vector.broadcast %14 : vector<128x1xf32> to vector<128x128xf32>
    %17 = vector.broadcast %15 : vector<1x128xf32> to vector<128x128xf32>
    %18 = arith.mulf %16, %17 : vector<128x128xf32>
    %19 = arith.addf %13, %18 : vector<128x128xf32>
    %cst = arith.constant 0.000000e+00 : f32
    %20 = vector.broadcast %cst : f32 to vector<128x128xf32>
    %21 = arith.maximumf %19, %20 : vector<128x128xf32>
    %c0_10 = arith.constant 0 : index
    %c0_11 = arith.constant 0 : index
    %22 = vector.load %arg3[%c0_10, %c0_11] : memref<1x128xf32, #tpu.memory_space<vmem>>, vector<1x128xf32>
    %23 = vector.broadcast %22 : vector<1x128xf32> to vector<128x128xf32>
    %24 = arith.mulf %21, %23 : vector<128x128xf32>
    %cst_12 = arith.constant dense<0.000000e+00> : vector<128xf32>
    %25 = vector.multi_reduction <add>, %24, %cst_12 [1] : vector<128x128xf32> to vector<128xf32>
    %26 = vector.shape_cast %25 : vector<128xf32> to vector<128x1xf32>
    %27 = math.tanh %26 : vector<128x1xf32>
    %cst_13 = arith.constant 2.000000e+00 : f32
    %28 = vector.broadcast %cst_13 : f32 to vector<128x1xf32>
    %29 = arith.mulf %28, %27 : vector<128x1xf32>
    %c0_14 = arith.constant 0 : index
    %c0_15 = arith.constant 0 : index
    %30 = vector.load %arg4[%c0_14, %c0_15] : memref<128x1xf32, #tpu.memory_space<vmem>>, vector<128x1xf32>
    tpu.vector_store %arg4[%c0_14, %c0_15], %29 {strides = array<i32>} : memref<128x1xf32, #tpu.memory_space<vmem>>, vector<128x1xf32>,
    return
  }
  func.func @transform_0(%arg0: i32) -> (i32, i32) {
    %c0_i32 = arith.constant 0 : i32
    %c0_i32_0 = arith.constant 0 : i32
    return %arg0, %c0_i32 : i32, i32
  }
  func.func @transform_1(%arg0: i32) -> (i32, i32) {
    %c0_i32 = arith.constant 0 : i32
    %c0_i32_0 = arith.constant 0 : i32
    %c0_i32_1 = arith.constant 0 : i32
    return %c0_i32, %c0_i32_0 : i32, i32
  }
  func.func @transform_2(%arg0: i32) -> (i32, i32) {
    %c0_i32 = arith.constant 0 : i32
    %c0_i32_0 = arith.constant 0 : i32
    %c0_i32_1 = arith.constant 0 : i32
    return %c0_i32, %c0_i32_0 : i32, i32
  }
  func.func @transform_3(%arg0: i32) -> (i32, i32) {
    %c0_i32 = arith.constant 0 : i32
    %c0_i32_0 = arith.constant 0 : i32
    return %arg0, %c0_i32 : i32, i32
  }
}

</mosaic_0001>

<bundles_post_ra>
// kernel: tpu_custom_call.1
= control target key start
LH: loop header
LB: loop body
LE: loop exit
PB: predicated region body
PF: predicated region fallthrough
CT: control target
= control target key end

     0   :  { %s786_s12 = smov 0   ;;  %s1003_s0 = inlined_call_operand.vmem [shape: f32[256,3], index: 0, kind: input, shape index: {}]   ;;  %s1004_s1 = inlined_call_operand.vmem [shape: f32[4,128], index: 1, kind: input, shape index: {}]   ;;  %s1005_s2 = inlined_call_operand.vmem [shape: f32[1,128], index: 2, kind: input, shape index: {}]   ;;  %s1006_s3 = inlined_call_operand.vmem [shape: f32[256,1], index: 3, kind: output, shape index: {}]  }
   0x1 LB: > { %s690_s13 = sadd.s32 4294967295, %s761_s12   ;;  %p694_p0 = scmp.ge.s32.totalorder %s761_s12, 1  ;;  %s761_s12 = sphi %s786_s12, %s13_s12  }
   0x2   : > { %p138_p1 = scmp.lt.s32.totalorder %s761_s12, 3 }
   0x4   : > { %p139_p2 = pnand %p694_p0, %p138_p1 }
   0x5   : > { %s695_s14 = sshll.u32 (!%p139_p2), %s690_s13, 4 }
   0x6   : > { %142 = sbr.rel (%p139_p2) target bundleno = 400 (0x190), region = 32  ;;  %p163_p3 = scmp.lt.s32.totalorder (!%p139_p2), %s695_s14, 31 }
   0xb   : > { %v763_v0 = vmov 0   ;;  %s1008_s14 = smov (!%p163_p3, %s695_s14), 31  ;;  %v764_v17 = vmov 1   ;;  %v765_v18 = vmov 2   ;;  %v837_v49 = vld [vmem:[%s1004_s1] ss:$0 sm:$0xff] }
   0xc   : > { %718 = vset.pattern.permute.xlu1 %v763_v0  ;;  %717 = vset.pattern.permute.xlu0 %v763_v0  ;;  %s696_s15 = sshll.u32 %s1008_s14, 3  ;;  %v842_v50 = vld [vmem:[%s1004_s1 + $0x1] ss:$0 sm:$0xff]  ;;  %v855_v57 = vld [vmem:[%s1004_s1 + $0x3] ss:$0 sm:$0xff]  ;;  %vm617_vm0 = vcmask 7168  }
   0xd   : > { %s166_s18 = scalar_lea.vmem %s1003_s0, %s696_s15  ;;  %v862_v60 = vld [vmem:[%s1004_s1 + $0x2] ss:$0 sm:$0xff]  ;;  %s966_s4 = scalar_lea.vmem %s1006_s3, %s696_s15 }
   0xe   : > { %v177_v1 = vld [vmem:[%s166_s18 + $0x10] sm:$0xff]  ;;  %v175_v2 = vld [vmem:[%s166_s18] sm:$0xff]  ;;  %v178_v3 = vld [vmem:[%s166_s18 + $0x18] sm:$0xff] }
   0xf   : > { %204 = vperm.xlu1 %718, %v177_v1   ;;  %194 = vperm.xlu0 %717, %v175_v2   ;;  %v176_v4 = vld [vmem:[%s166_s18 + $0x8] sm:$0xff]  ;;  %v179_v6 = vld [vmem:[%s166_s18 + $0x20] sm:$0xff]  ;;  %v182_v7 = vld [vmem:[%s166_s18 + $0x38] sm:$0xff] }
  0x10   : > { %v180_v5 = vld [vmem:[%s166_s18 + $0x28] sm:$0xff]  ;;  %v181_v8 = vld [vmem:[%s166_s18 + $0x30] sm:$0xff]  ;;  %v183_v10 = vld [vmem:[%s166_s18 + $0x40] sm:$0xff] }
  0x11   : > { %v184_v9 = vld [vmem:[%s166_s18 + $0x48] sm:$0xff]  ;;  %v186_v11 = vld [vmem:[%s166_s18 + $0x58] sm:$0xff]  ;;  %v185_v12 = vld [vmem:[%s166_s18 + $0x50] sm:$0xff] }
  0x12   : > { %v188_v13 = vld [vmem:[%s166_s18 + $0x68] sm:$0xff]  ;;  %v187_v14 = vld [vmem:[%s166_s18 + $0x60] sm:$0xff]  ;;  %v190_v15 = vld [vmem:[%s166_s18 + $0x78] sm:$0xff] }
  0x13   : > { %209 = vperm.xlu1 %718, %v178_v3   ;;  %199 = vperm.xlu0 %717, %v176_v4   ;;  %v189_v16 = vld [vmem:[%s166_s18 + $0x70] sm:$0xff] }
  0x17   : > { %219 = vperm.xlu1 %718, %v180_v5   ;;  %214 = vperm.xlu0 %717, %v179_v6  }
  0x1b   : > { %229 = vperm.xlu1 %718, %v182_v7   ;;  %224 = vperm.xlu0 %717, %v181_v8  }
  0x1f   : > { %239 = vperm.xlu1 %718, %v184_v9   ;;  %234 = vperm.xlu0 %717, %v183_v10  }
  0x23   : > { %249 = vperm.xlu1 %718, %v186_v11   ;;  %244 = vperm.xlu0 %717, %v185_v12  }
  0x27   : > { %259 = vperm.xlu1 %718, %v188_v13   ;;  %254 = vperm.xlu0 %717, %v187_v14  }
  0x2b   : > { %269 = vperm.xlu1 %718, %v190_v15   ;;  %264 = vperm.xlu0 %717, %v189_v16  }
  0x2f   : > { %720 = vset.pattern.permute.xlu1 %v764_v17  ;;  %719 = vset.pattern.permute.xlu0 %v764_v17 }
  0x30   : > { %318 = vperm.xlu1 %720, %v176_v4   ;;  %314 = vperm.xlu0 %719, %v175_v2  }
  0x34   : > { %322 = vperm.xlu1 %720, %v177_v1   ;;  %326 = vperm.xlu0 %719, %v178_v3  }
  0x38   : > { %330 = vperm.xlu1 %720, %v179_v6   ;;  %334 = vperm.xlu0 %719, %v180_v5  }
  0x3c   : > { %338 = vperm.xlu1 %720, %v181_v8   ;;  %342 = vperm.xlu0 %719, %v182_v7  }
  0x40   : > { %346 = vperm.xlu1 %720, %v183_v10   ;;  %350 = vperm.xlu0 %719, %v184_v9  }
  0x44   : > { %354 = vperm.xlu1 %720, %v185_v12   ;;  %358 = vperm.xlu0 %719, %v186_v11  }
  0x48   : > { %362 = vperm.xlu1 %720, %v187_v14   ;;  %366 = vperm.xlu0 %719, %v188_v13  }
  0x4c   : > { %370 = vperm.xlu1 %720, %v189_v16   ;;  %374 = vperm.xlu0 %719, %v190_v15  }
  0x50   : > { %721 = vset.pattern.permute.xlu1 %v765_v18  ;;  %722 = vset.pattern.permute.xlu0 %v765_v18 }
  0x51   : > { %415 = vperm.xlu1 %721, %v175_v2   ;;  %419 = vperm.xlu0 %722, %v176_v4  }
  0x55   : > { %423 = vperm.xlu1 %721, %v177_v1   ;;  %431 = vperm.xlu0 %722, %v179_v6  }
  0x59   : > { %427 = vperm.xlu1 %721, %v178_v3   ;;  %439 = vperm.xlu0 %722, %v181_v8  }
  0x5d   : > { %435 = vperm.xlu1 %721, %v180_v5   ;;  %447 = vperm.xlu0 %722, %v183_v10  }
  0x61   : > { %443 = vperm.xlu1 %721, %v182_v7   ;;  %455 = vperm.xlu0 %722, %v185_v12  }
  0x65   : > { %451 = vperm.xlu1 %721, %v184_v9   ;;  %463 = vperm.xlu0 %722, %v187_v14  }
  0x69   : > { %459 = vperm.xlu1 %721, %v186_v11   ;;  %471 = vperm.xlu0 %722, %v189_v16  }
  0x6d   : > { %467 = vperm.xlu1 %721, %v188_v13  }
  0x71   : > { %475 = vperm.xlu1 %721, %v190_v15  }
  0x8a   : > { %v205_v19 = vpop.permute.xlu1 %204  ;;  %v195_v20 = vpop.permute.xlu0 %194 }
  0x8b   : > { %v276_v51 = vmul.f32 %v837_v49, %v195_v20  ;;  %v278_v58 = vmul.f32 %v837_v49, %v205_v19  ;;  %v879_v19 = vld [vmem:[%s1005_s2] ss:$0 sm:$0xff] }
  0x8d   : > { %v296_v61 = vadd.f32 %v855_v57, %v276_v51  ;;  %v298_v7 = vadd.f32 %v855_v57, %v278_v58 }
  0x8e   : > { %v210_v21 = vpop.permute.xlu1 %209  ;;  %v200_v22 = vpop.permute.xlu0 %199 }
  0x8f   : > { %v277_v52 = vmul.f32 %v837_v49, %v200_v22  ;;  %v279_v8 = vmul.f32 %v837_v49, %v210_v21 }
  0x91   : > { %v297_v62 = vadd.f32 %v855_v57, %v277_v52 }
  0x92   : > { %v802_v23 = vpop.permute.xlu1 %219  ;;  %v215_v24 = vpop.permute.xlu0 %214 }
  0x93   : > { %v280_v59 = vmul.f32 %v837_v49, %v215_v24 }
  0x95   : > { %v300_v9 = vadd.f32 %v855_v57, %v280_v59 }
  0x96   : > { %v804_v25 = vpop.permute.xlu1 %229  ;;  %v225_v26 = vpop.permute.xlu0 %224 }
  0x97   : > { %v282_v10 = vmul.f32 %v837_v49, %v225_v26  ;;  %v299_v26 = vadd.f32 %v855_v57, %v279_v8 }
  0x9a   : > { %v806_v27 = vpop.permute.xlu1 %239  ;;  %v808_v28 = vpop.permute.xlu0 %234 }
  0x9e   : > { %v810_v29 = vpop.permute.xlu1 %249  ;;  %v812_v30 = vpop.permute.xlu0 %244 }
  0xa2   : > { %v814_v31 = vpop.permute.xlu1 %259  ;;  %v816_v32 = vpop.permute.xlu0 %254 }
  0xa6   : > { %v818_v33 = vpop.permute.xlu1 %269  ;;  %v820_v34 = vpop.permute.xlu0 %264 }
  0xab   : > { %v319_v35 = vpop.permute.xlu1 %318  ;;  %v315_v36 = vpop.permute.xlu0 %314 }
  0xac   : > { %v382_v55 = vmul.f32 %v842_v50, %v319_v35  ;;  %v381_v56 = vmul.f32 %v842_v50, %v315_v36  ;;  %v281_v35 = vmul.f32 %v837_v49, %v802_v23  ;;  %v302_v36 = vadd.f32 %v855_v57, %v282_v10 }
  0xae   : > { %v398_v3 = vadd.f32 %v382_v55, %v297_v62  ;;  %v397_v4 = vadd.f32 %v381_v56, %v296_v61 }
  0xaf   : > { %v323_v37 = vpop.permute.xlu1 %322  ;;  %v327_v38 = vpop.permute.xlu0 %326 }
  0xb0   : > { %v383_v63 = vmul.f32 %v842_v50, %v323_v37  ;;  %v384_v14 = vmul.f32 %v842_v50, %v327_v38  ;;  %v284_v37 = vmul.f32 %v837_v49, %v808_v28 }
  0xb2   : > { %v399_v13 = vadd.f32 %v383_v63, %v298_v7  ;;  %v400_v52 = vadd.f32 %v384_v14, %v299_v26 }
  0xb3   : > { %v331_v39 = vpop.permute.xlu1 %330  ;;  %v335_v40 = vpop.permute.xlu0 %334 }
  0xb4   : > { %v385_v0 = vmul.f32 %v842_v50, %v331_v39  ;;  %v386_v55 = vmul.f32 %v842_v50, %v335_v40  ;;  %v304_v40 = vadd.f32 %v855_v57, %v284_v37 }
  0xb6   : > { %v401_v15 = vadd.f32 %v385_v0, %v300_v9  ;;  %v301_v0 = vadd.f32 %v855_v57, %v281_v35 }
  0xb7   : > { %v339_v41 = vpop.permute.xlu1 %338  ;;  %v822_v42 = vpop.permute.xlu0 %342 }
  0xb8   : > { %v387_v16 = vmul.f32 %v842_v50, %v339_v41  ;;  %v388_v7 = vmul.f32 %v842_v50, %v822_v42 }
  0xba   : > { %v403_v56 = vadd.f32 %v387_v16, %v302_v36 }
  0xbb   : > { %v347_v43 = vpop.permute.xlu1 %346  ;;  %v824_v44 = vpop.permute.xlu0 %350 }
  0xbc   : > { %v389_v58 = vmul.f32 %v842_v50, %v347_v43  ;;  %v286_v43 = vmul.f32 %v837_v49, %v812_v30 }
  0xbe   : > { %v405_v8 = vadd.f32 %v389_v58, %v304_v40  ;;  %v306_v42 = vadd.f32 %v855_v57, %v286_v43  ;;  %v289_v40 = vmul.f32 %v837_v49, %v814_v31 }
  0xbf   : > { %v826_v45 = vpop.permute.xlu1 %354  ;;  %v828_v46 = vpop.permute.xlu0 %358 }
  0xc0   : > { %v391_v9 = vmul.f32 %v842_v50, %v826_v45  ;;  %v288_v45 = vmul.f32 %v837_v49, %v816_v32 }
  0xc3   : > { %v830_v47 = vpop.permute.xlu1 %362  ;;  %v832_v48 = vpop.permute.xlu0 %366 }
  0xc4   : > { %v393_v26 = vmul.f32 %v842_v50, %v830_v47  ;;  %v290_v47 = vmul.f32 %v837_v49, %v820_v34 }
  0xc7   : > { %v846_v53 = vpop.permute.xlu1 %370  ;;  %v848_v54 = vpop.permute.xlu0 %374 }
  0xcc   : > { %v416_v1 = vpop.permute.xlu1 %415  ;;  %v420_v2 = vpop.permute.xlu0 %419 }
  0xcd   : > { %v482_v5 = vmul.f32 %v862_v60, %v416_v1  ;;  %v483_v6 = vmul.f32 %v862_v60, %v420_v2  ;;  %v283_v1 = vmul.f32 %v837_v49, %v804_v25 }
  0xcf   : > { %v498_v11 = vadd.f32 %v482_v5, %v397_v4  ;;  %v499_v12 = vadd.f32 %v483_v6, %v398_v3  ;;  %v402_v6 = vadd.f32 %v386_v55, %v301_v0  ;;  %v303_v14 = vadd.f32 %v855_v57, %v283_v1 }
  0xd0   : > { %v424_v17 = vpop.permute.xlu1 %423  ;;  %v432_v18 = vpop.permute.xlu0 %431 }
  0xd1   : > { %v514_v20 = vmax.f32 %v498_v11, 0.0  ;;  %v515_v21 = vmax.f32 %v499_v12, 0.0  ;;  %v484_v22 = vmul.f32 %v862_v60, %v424_v17  ;;  %v486_v24 = vmul.f32 %v862_v60, %v432_v18 }
  0xd3   : > { %v500_v38 = vadd.f32 %v484_v22, %v399_v13  ;;  %v502_v39 = vadd.f32 %v486_v24, %v401_v15  ;;  %v537_v41 = vmul.f32 %v879_v19, %v514_v20  ;;  %v538_v51 = vmul.f32 %v879_v19, %v515_v21 }
  0xd4   : > { %v428_v59 = vpop.permute.xlu1 %427  ;;  %v440_v61 = vpop.permute.xlu0 %439  ;;  %v285_v15 = vmul.f32 %v837_v49, %v806_v27  ;;  %v404_v21 = vadd.f32 %v388_v7, %v303_v14  ;;  %v390_v22 = vmul.f32 %v842_v50, %v824_v44  ;;  %v407_v24 = vadd.f32 %v391_v9, %v306_v42 }
  0xd5   : > { %v516_v23 = vmax.f32 %v500_v38, 0.0  ;;  %v518_v62 = vmax.f32 %v502_v39, 0.0  ;;  %v485_v63 = vmul.f32 %v862_v60, %v428_v59  ;;  %v488_v28 = vmul.f32 %v862_v60, %v440_v61  ;;  %553 = vadd.xlane.f32.xlu0 %v537_v41  ;;  %555 = vadd.xlane.f32.xlu1 %v538_v51 }
  0xd6   : > { %v305_v39 = vadd.f32 %v855_v57, %v285_v15  ;;  %v287_v41 = vmul.f32 %v837_v49, %v810_v29  ;;  %v308_v44 = vadd.f32 %v855_v57, %v288_v45  ;;  %v392_v59 = vmul.f32 %v842_v50, %v828_v46 }
  0xd7   : > { %v501_v2 = vadd.f32 %v485_v63, %v400_v52  ;;  %v504_v3 = vadd.f32 %v488_v28, %v403_v56  ;;  %v539_v4 = vmul.f32 %v879_v19, %v516_v23  ;;  %v541_v5 = vmul.f32 %v879_v19, %v518_v62 }
  0xd8   : > { %v436_v25 = vpop.permute.xlu1 %435  ;;  %v448_v10 = vpop.permute.xlu0 %447  ;;  %v406_v58 = vadd.f32 %v390_v22, %v305_v39  ;;  %v409_v61 = vadd.f32 %v393_v26, %v308_v44  ;;  %v395_v23 = vmul.f32 %v842_v50, %v846_v53  ;;  %v307_v1 = vadd.f32 %v855_v57, %v287_v41 }
  0xd9   : > { %v517_v11 = vmax.f32 %v501_v2, 0.0  ;;  %v520_v12 = vmax.f32 %v504_v3, 0.0  ;;  %v487_v30 = vmul.f32 %v862_v60, %v436_v25  ;;  %v490_v13 = vmul.f32 %v862_v60, %v448_v10  ;;  %557 = vadd.xlane.f32.xlu0 %v539_v4  ;;  %561 = vadd.xlane.f32.xlu1 %v541_v5 }
  0xda   : > { %v310_v46 = vadd.f32 %v855_v57, %v290_v47  ;;  %v408_v4 = vadd.f32 %v392_v59, %v307_v1  ;;  %v394_v5 = vmul.f32 %v842_v50, %v832_v48  ;;  %v396_v45 = vmul.f32 %v842_v50, %v848_v54 }
  0xdb   : > { %v503_v16 = vadd.f32 %v487_v30, %v402_v6  ;;  %v506_v17 = vadd.f32 %v490_v13, %v405_v8  ;;  %v540_v18 = vmul.f32 %v879_v19, %v517_v11  ;;  %v543_v20 = vmul.f32 %v879_v19, %v520_v12 }
  0xdc   : > { %v444_v27 = vpop.permute.xlu1 %443  ;;  %v456_v35 = vpop.permute.xlu0 %455  ;;  %v411_v6 = vadd.f32 %v395_v23, %v310_v46  ;;  %v309_v11 = vadd.f32 %v855_v57, %v289_v40  ;;  %v291_v12 = vmul.f32 %v837_v49, %v818_v33 }
  0xdd   : > { %v519_v36 = vmax.f32 %v503_v16, 0.0  ;;  %v522_v37 = vmax.f32 %v506_v17, 0.0  ;;  %v489_v32 = vmul.f32 %v862_v60, %v444_v27  ;;  %v492_v38 = vmul.f32 %v862_v60, %v456_v35  ;;  %559 = vadd.xlane.f32.xlu0 %v540_v18  ;;  %565 = vadd.xlane.f32.xlu1 %v543_v20 }
  0xde   : > { %v410_v15 = vadd.f32 %v394_v5, %v309_v11  ;;  %v311_v20 = vadd.f32 %v855_v57, %v291_v12 }
  0xdf   : > { %v505_v51 = vadd.f32 %v489_v32, %v404_v21  ;;  %v508_v52 = vadd.f32 %v492_v38, %v407_v24  ;;  %v542_v55 = vmul.f32 %v879_v19, %v519_v36  ;;  %v545_v56 = vmul.f32 %v879_v19, %v522_v37 }
  0xe0   : > { %v452_v29 = vpop.permute.xlu1 %451  ;;  %v464_v62 = vpop.permute.xlu0 %463  ;;  %v412_v24 = vadd.f32 %v396_v45, %v311_v20 }
  0xe1   : > { %v521_v63 = vmax.f32 %v505_v51, 0.0  ;;  %v524_v28 = vmax.f32 %v508_v52, 0.0  ;;  %v491_v34 = vmul.f32 %v862_v60, %v452_v29  ;;  %v494_v0 = vmul.f32 %v862_v60, %v464_v62  ;;  %563 = vadd.xlane.f32.xlu0 %v542_v55  ;;  %569 = vadd.xlane.f32.xlu1 %v545_v56 }
  0xe3   : > { %v507_v43 = vadd.f32 %v491_v34, %v406_v58  ;;  %v510_v2 = vadd.f32 %v494_v0, %v409_v61  ;;  %v544_v53 = vmul.f32 %v879_v19, %v521_v63  ;;  %v547_v3 = vmul.f32 %v879_v19, %v524_v28 }
  0xe4   : > { %v460_v7 = vpop.permute.xlu1 %459  ;;  %v472_v8 = vpop.permute.xlu0 %471 }
  0xe5   : > { %v523_v9 = vmax.f32 %v507_v43, 0.0  ;;  %v526_v25 = vmax.f32 %v510_v2, 0.0  ;;  %v493_v10 = vmul.f32 %v862_v60, %v460_v7  ;;  %v496_v31 = vmul.f32 %v862_v60, %v472_v8  ;;  %567 = vadd.xlane.f32.xlu0 %v544_v53  ;;  %573 = vadd.xlane.f32.xlu1 %v547_v3 }
  0xe7   : > { %v509_v30 = vadd.f32 %v493_v10, %v408_v4  ;;  %v512_v13 = vadd.f32 %v496_v31, %v411_v6  ;;  %v546_v48 = vmul.f32 %v879_v19, %v523_v9  ;;  %v549_v14 = vmul.f32 %v879_v19, %v526_v25 }
  0xe8   : > { %v468_v42 = vpop.permute.xlu1 %467 }
  0xe9   : > { %v525_v16 = vmax.f32 %v509_v30, 0.0  ;;  %v528_v17 = vmax.f32 %v512_v13, 0.0  ;;  %v495_v18 = vmul.f32 %v862_v60, %v468_v42  ;;  %571 = vadd.xlane.f32.xlu0 %v546_v48  ;;  %577 = vadd.xlane.f32.xlu1 %v549_v14 }
  0xeb   : > { %v511_v33 = vadd.f32 %v495_v18, %v410_v15  ;;  %v548_v49 = vmul.f32 %v879_v19, %v525_v16  ;;  %v551_v21 = vmul.f32 %v879_v19, %v528_v17 }
  0xec   : > { %v476_v22 = vpop.permute.xlu1 %475 }
  0xed   : > { %v527_v26 = vmax.f32 %v511_v33, 0.0  ;;  %v497_v27 = vmul.f32 %v862_v60, %v476_v22  ;;  %575 = vadd.xlane.f32.xlu0 %v548_v49  ;;  %581 = vadd.xlane.f32.xlu1 %v551_v21 }
  0xef   : > { %v513_v50 = vadd.f32 %v497_v27, %v412_v24  ;;  %v550_v54 = vmul.f32 %v879_v19, %v527_v26 }
  0xf1   : > { %v529_v35 = vmax.f32 %v513_v50, 0.0  ;;  %579 = vadd.xlane.f32.xlu0 %v550_v54 }
  0xf3   : > { %v552_v36 = vmul.f32 %v879_v19, %v529_v35 }
  0xf5   : > { %583 = vadd.xlane.f32.xlu0 %v552_v36 }
 0x15e   : > { %v556_v57 = vpop.xlane.xlu1 %555  ;;  %v554_v37 = vpop.xlane.xlu0 %553 }
 0x15f   : > { %723 = vtanh.f32 %v556_v57 }
 0x160   : > { %725 = vtanh.f32 %v554_v37 }
 0x162   : > { %v562_v32 = vpop.xlane.xlu1 %561  ;;  %v558_v38 = vpop.xlane.xlu0 %557 }
 0x163   : > { %727 = vtanh.f32 %v562_v32 }
 0x164   : > { %729 = vtanh.f32 %v558_v38 }
 0x166   : > { %v566_v60 = vpop.xlane.xlu1 %565  ;;  %v560_v39 = vpop.xlane.xlu0 %559 }
 0x167   : > { %731 = vtanh.f32 %v566_v60 }
 0x168   : > { %733 = vtanh.f32 %v560_v39 }
 0x16a   : > { %v570_v41 = vpop.xlane.xlu1 %569  ;;  %v564_v44 = vpop.xlane.xlu0 %563 }
 0x16b   : > { %735 = vtanh.f32 %v570_v41 }
 0x16c   : > { %v724_v47 = vpop.eup %723  ;;  %737 = vtanh.f32 %v564_v44 }
 0x16d   : > { %v726_v19 = vpop.eup %725  ;;  %v602_v51 = vmul.f32 2.0, %v724_v47 }
 0x16e   : > { %v601_v52 = vmul.f32 2.0, %v726_v19  ;;  %v574_v55 = vpop.xlane.xlu1 %573  ;;  %v568_v56 = vpop.xlane.xlu0 %567 }
 0x16f   : > { %619 = vst.msk [vmem:[%s966_s4 + $0x8] sm:$0xff] %vm617_vm0, %v602_v51  ;;  %739 = vtanh.f32 %v574_v55 }
 0x170   : > { %v728_v58 = vpop.eup %727  ;;  %618 = vst.msk [vmem:[%s966_s4] sm:$0xff] %vm617_vm0, %v601_v52  ;;  %741 = vtanh.f32 %v568_v56 }
 0x171   : > { %v730_v59 = vpop.eup %729  ;;  %v605_v61 = vmul.f32 2.0, %v728_v58 }
 0x172   : > { %v603_v23 = vmul.f32 2.0, %v730_v59  ;;  %v578_v29 = vpop.xlane.xlu1 %577  ;;  %v572_v62 = vpop.xlane.xlu0 %571 }
 0x173   : > { %622 = vst.msk [vmem:[%s966_s4 + $0x20] sm:$0xff] %vm617_vm0, %v605_v61  ;;  %743 = vtanh.f32 %v578_v29 }
 0x174   : > { %v732_v63 = vpop.eup %731  ;;  %620 = vst.msk [vmem:[%s966_s4 + $0x10] sm:$0xff] %vm617_vm0, %v603_v23  ;;  %745 = vtanh.f32 %v572_v62 }
 0x175   : > { %v734_v28 = vpop.eup %733  ;;  %v607_v34 = vmul.f32 2.0, %v732_v63 }
 0x176   : > { %v604_v0 = vmul.f32 2.0, %v734_v28  ;;  %v582_v1 = vpop.xlane.xlu1 %581  ;;  %v576_v40 = vpop.xlane.xlu0 %575 }
 0x177   : > { %624 = vst.msk [vmem:[%s966_s4 + $0x30] sm:$0xff] %vm617_vm0, %v607_v34  ;;  %747 = vtanh.f32 %v582_v1 }
 0x178   : > { %v736_v46 = vpop.eup %735  ;;  %621 = vst.msk [vmem:[%s966_s4 + $0x18] sm:$0xff] %vm617_vm0, %v604_v0  ;;  %749 = vtanh.f32 %v576_v40 }
 0x179   : > { %v738_v43 = vpop.eup %737  ;;  %v609_v2 = vmul.f32 2.0, %v736_v46 }
 0x17a   : > { %v606_v53 = vmul.f32 2.0, %v738_v43  ;;  %v580_v3 = vpop.xlane.xlu0 %579 }
 0x17b   : > { %626 = vst.msk [vmem:[%s966_s4 + $0x40] sm:$0xff] %vm617_vm0, %v609_v2  ;;  %751 = vtanh.f32 %v580_v3 }
 0x17c   : > { %v740_v4 = vpop.eup %739  ;;  %623 = vst.msk [vmem:[%s966_s4 + $0x28] sm:$0xff] %vm617_vm0, %v606_v53 }
 0x17d   : > { %v742_v5 = vpop.eup %741  ;;  %v611_v6 = vmul.f32 2.0, %v740_v4 }
 0x17e   : > { %v608_v7 = vmul.f32 2.0, %v742_v5  ;;  %v584_v8 = vpop.xlane.xlu0 %583 }
 0x17f   : > { %628 = vst.msk [vmem:[%s966_s4 + $0x50] sm:$0xff] %vm617_vm0, %v611_v6  ;;  %753 = vtanh.f32 %v584_v8 }
 0x180   : > { %v744_v9 = vpop.eup %743  ;;  %625 = vst.msk [vmem:[%s966_s4 + $0x38] sm:$0xff] %vm617_vm0, %v608_v7 }
 0x181   : > { %v746_v25 = vpop.eup %745  ;;  %v613_v10 = vmul.f32 2.0, %v744_v9 }
 0x182   : > { %v610_v31 = vmul.f32 2.0, %v746_v25 }
 0x183   : > { %630 = vst.msk [vmem:[%s966_s4 + $0x60] sm:$0xff] %vm617_vm0, %v613_v10 }
 0x184   : > { %v748_v11 = vpop.eup %747  ;;  %627 = vst.msk [vmem:[%s966_s4 + $0x48] sm:$0xff] %vm617_vm0, %v610_v31 }
 0x185   : > { %v750_v12 = vpop.eup %749  ;;  %v615_v30 = vmul.f32 2.0, %v748_v11 }
 0x186   : > { %v612_v13 = vmul.f32 2.0, %v750_v12 }
 0x187   : > { %632 = vst.msk [vmem:[%s966_s4 + $0x70] sm:$0xff] %vm617_vm0, %v615_v30 }
 0x188   : > { %v752_v48 = vpop.eup %751  ;;  %629 = vst.msk [vmem:[%s966_s4 + $0x58] sm:$0xff] %vm617_vm0, %v612_v13 }
 0x189   : > { %v614_v14 = vmul.f32 2.0, %v752_v48 }
 0x18b   : > { %631 = vst.msk [vmem:[%s966_s4 + $0x68] sm:$0xff] %vm617_vm0, %v614_v14 }
 0x18c   : > { %v754_v15 = vpop.eup %753 }
 0x18d   : > { %v616_v42 = vmul.f32 2.0, %v754_v15 }
 0x18f   : > { %633 = vst.msk [vmem:[%s966_s4 + $0x78] sm:$0xff] %vm617_vm0, %v616_v42 }
 0x190 PF: > { %s13_s12 = sadd.s32 1, %s761_s12  }
 0x191   : > { %p10_p4 = scmp.ge.s32.totalorder %s13_s12, 4  }
 0x193   :  { %12 = sbr.rel (!%p10_p4) target bundleno = 1 (0x1), region = 62 }

</bundles_post_ra>
